<compile_context>
chip_gen: v5e
topology: v5e:2x2
jax: 0.10.0
libtpu: 0.0.40
codegen_flags: <defaults>
</compile_context>

<pallas_src>
import functools
import math

import jax
import jax.numpy as jnp
from jax import lax
from jax.experimental import pallas as pl
from jax.experimental.pallas import tpu as pltpu


_LANE = 128
_BASE_SUBLANE = 8
_MIN_GRID_STEPS = 4
_MAX_VMEM_LIMIT = 96 * 1024 * 1024
_MAX_BLOCK_BYTES = 12 * 1024 * 1024
_FALLBACK_VMEM_CAP = 64 * 1024 * 1024   # v7x per-TC VMEM (most conservative)


def _round_up(x, m):
    return ((x + m - 1) // m) * m


def _vmem_budget():
    """Generation-aware (vmem_limit_bytes, target_block_bytes)."""
    cap = None
    try:
        info = pltpu.get_tpu_info()
        for name in ("vmem_capacity_bytes", "vmem_size_bytes", "vmem_bytes"):
            cap = getattr(info, name, None)
            if cap:
                break
    except Exception:
        cap = None
    if not cap:
        cap = _FALLBACK_VMEM_CAP
    limit = min(int(cap) * 3 // 4, _MAX_VMEM_LIMIT)
    # 3 arrays x 2 pipeline buffers = 6 live blocks; keep headroom.
    target = max(1 << 20, min(limit // 8, _MAX_BLOCK_BYTES))
    return limit, target


def _packed_sublane(itemsize):
    """Sublane multiple so row tiles are unmasked full-vreg tiles per dtype."""
    return max(_BASE_SUBLANE, (_BASE_SUBLANE * 4) // max(1, itemsize))


def _pick_lane_width(n, sublane):
    """Largest lane-dense width (multiple of 128) dividing n, preferring one
    that leaves at least `sublane` rows. None if n is not a multiple of 128."""
    candidates = (8192, 4096, 2048, 1024, 512, 256, 128)
    best = None
    for w in candidates:
        if n % w == 0:
            if best is None:
                best = w
            if n // w >= sublane:
                return w
    return best


def _choose_row_tile(rows, row_bytes, sublane, target_bytes):
    """Sublane-aligned row tile ~target_bytes per block, with a cap that keeps
    at least ~_MIN_GRID_STEPS grid steps when rows is large enough (DMA overlap
    + v7x megacore)."""
    if rows <= sublane:
        return rows
    tm = max(sublane, (target_bytes // max(1, row_bytes)) // sublane * sublane)
    if rows > 2 * sublane:
        cap = max(sublane, _round_up(pl.cdiv(rows, _MIN_GRID_STEPS), sublane))
        tm = min(tm, cap)
    return rows if tm >= rows else tm


# ----------------------------- kernels -----------------------------

def _sub_kernel(base_ref, src_ref, out_ref):
    # Full-width subtraction: pure vld/vld/vsub/vst streaming, mem-bound.
    out_ref[...] = base_ref[...] - src_ref[...]


def _sub_masked_kernel(base_ref, src_ref, out_ref, *, d, tn):
    # Partial intervention: subtract only global columns < d. The iota/compare/
    # select is free VPU filler under the HBM-bound regime.
    b = base_ref[...]
    s = src_ref[...]
    col = pl.program_id(1) * tn + lax.broadcasted_iota(jnp.int32, b.shape,
                                                       b.ndim - 1)
    out_ref[...] = jnp.where(col < d, b - s, b)


# ----------------------------- wrapper -----------------------------

def subtraction_intervention(base, source, interchange_dim=None):
    """Pallas implementation of SubtractionIntervention.forward.

    base, source: (..., embed_dim), same shape & dtype.
    interchange_dim: static int (defaults to embed_dim, like the PyTorch module).
    """
    assert base.shape == source.shape and base.dtype == source.dtype
    orig_shape = base.shape
    D = int(orig_shape[-1]) if len(orig_shape) > 0 else 1
    rows = int(math.prod(orig_shape[:-1])) if len(orig_shape) > 1 else 1
    d = D if interchange_dim is None else int(interchange_dim)
    assert 0 <= d <= D

    if d == 0 or base.size == 0:
        return base

    itemsize = jnp.dtype(base.dtype).itemsize
    sublane = _packed_sublane(itemsize)
    vmem_limit, target_bytes = _vmem_budget()

    # ---- fast path: full-width subtraction (module default), no mask ----
    if d == D:
        n = rows * D
        w = _pick_lane_width(n, sublane)
        if w is not None:
            rows2, cols2 = n // w, w            # lane-dense contiguous view
        else:
            rows2, cols2 = rows, D              # tiny / odd sizes: keep (rows, D)
        b2 = base.reshape(rows2, cols2)
        s2 = source.reshape(rows2, cols2)
        tm = _choose_row_tile(rows2, cols2 * itemsize, sublane, target_bytes)
        out = pl.pallas_call(
            _sub_kernel,
            out_shape=jax.ShapeDtypeStruct((rows2, cols2), base.dtype),
            grid=(pl.cdiv(rows2, tm),),
            in_specs=[pl.BlockSpec((tm, cols2), lambda i: (i, 0)),
                      pl.BlockSpec((tm, cols2), lambda i: (i, 0))],
            out_specs=pl.BlockSpec((tm, cols2), lambda i: (i, 0)),
            compiler_params=pltpu.CompilerParams(
                dimension_semantics=("parallel",),
                vmem_limit_bytes=vmem_limit),
        )(b2, s2)
        return out.reshape(orig_shape)

    # ---- partial intervention (0 < d < D): contiguous full-row masked sub ----
    b2 = base.reshape(rows, D)
    s2 = source.reshape(rows, D)

    # Keep the full row (one contiguous HBM slab per block row) unless a single
    # sublane-row block of the full width already exceeds the block budget.
    if D % _LANE == 0 and sublane * D * itemsize > target_bytes:
        tn = max(_LANE,
                 ((target_bytes // (sublane * itemsize)) // _LANE) * _LANE)
    else:
        tn = D
    nc = pl.cdiv(D, tn)
    tm = _choose_row_tile(rows, tn * itemsize, sublane, target_bytes)

    kernel = functools.partial(_sub_masked_kernel, d=d, tn=tn)
    out = pl.pallas_call(
        kernel,
        out_shape=jax.ShapeDtypeStruct((rows, D), base.dtype),
        grid=(pl.cdiv(rows, tm), nc),
        in_specs=[pl.BlockSpec((tm, tn), lambda i, j: (i, j)),
                  pl.BlockSpec((tm, tn), lambda i, j: (i, j))],
        out_specs=pl.BlockSpec((tm, tn), lambda i, j: (i, j)),
        compiler_params=pltpu.CompilerParams(
            dimension_semantics=("parallel", "parallel"),
            vmem_limit_bytes=vmem_limit),
    )(b2, s2)
    return out.reshape(orig_shape)


if __name__ == "__main__":
    key = jax.random.PRNGKey(0)
    k1, k2, k3, k4 = jax.random.split(key, 4)

    # --- case 1: module default (interchange_dim == embed_dim), flat fast path ---
    batch, seq, embed_dim = 2, 8, 256
    base_a = jax.random.normal(k1, (batch, seq, embed_dim), dtype=jnp.float32)
    src_a = jax.random.normal(k2, (batch, seq, embed_dim), dtype=jnp.float32)
    ref_a = base_a - src_a

    # --- case 2: partial intervention (d < D, D a multiple of 128), masked path ---
    d_partial = 100
    ref_b = base_a.at[..., :d_partial].add(-src_a[..., :d_partial])

    # --- case 3: small non-128-multiple embed_dim, masked path (tn == D) ---
    base_c = jax.random.normal(k3, (batch, seq, 32), dtype=jnp.float32)
    src_c = jax.random.normal(k4, (batch, seq, 32), dtype=jnp.float32)
    d_small = 20
    ref_c = base_c.at[..., :d_small].add(-src_c[..., :d_small])

    out_a = jax.block_until_ready(subtraction_intervention(base_a, src_a))
    out_b = jax.block_until_ready(
        subtraction_intervention(base_a, src_a, d_partial))
    out_c = jax.block_until_ready(
        subtraction_intervention(base_c, src_c, d_small))

    assert out_a.shape == ref_a.shape and out_a.dtype == ref_a.dtype
    assert jnp.allclose(out_a, ref_a, atol=1e-6, rtol=1e-6)
    assert jnp.allclose(out_b, ref_b, atol=1e-6, rtol=1e-6)
    assert jnp.allclose(out_c, ref_c, atol=1e-6, rtol=1e-6)

    print("KERNEL_OK")
</pallas_src>

<mosaic_0001>
module attributes {stable_mosaic.version = 11 : i64} {
  func.func @_sub_kernel(%arg0: i32, %arg1: memref<8x512xf32, #tpu.memory_space<vmem>>, %arg2: memref<8x512xf32, #tpu.memory_space<vmem>>, %arg3: memref<8x512xf32, #tpu.memory_space<vmem>>) attributes {dimension_semantics = [#tpu.dimension_semantics<parallel>], iteration_bounds = array<i64: 1>, scalar_prefetch = 0 : i64, scratch_operands = 0 : i64, tpu.core_type = #tpu.core_type<tc>, window_params = [{transform_indices = @transform_0, window_bounds = array<i64: 8, 512>}, {transform_indices = @transform_1, window_bounds = array<i64: 8, 512>}, {transform_indices = @transform_2, window_bounds = array<i64: 8, 512>}]} {
    %c0 = arith.constant 0 : index
    %c0_0 = arith.constant 0 : index
    %0 = vector.load %arg1[%c0, %c0_0] : memref<8x512xf32, #tpu.memory_space<vmem>>, vector<8x512xf32>
    %c0_1 = arith.constant 0 : index
    %c0_2 = arith.constant 0 : index
    %1 = vector.load %arg2[%c0_1, %c0_2] : memref<8x512xf32, #tpu.memory_space<vmem>>, vector<8x512xf32>
    %2 = arith.subf %0, %1 : vector<8x512xf32>
    %c0_3 = arith.constant 0 : index
    %c0_4 = arith.constant 0 : index
    %3 = vector.load %arg3[%c0_3, %c0_4] : memref<8x512xf32, #tpu.memory_space<vmem>>, vector<8x512xf32>
    tpu.vector_store %arg3[%c0_3, %c0_4], %2 {strides = array<i32>} : memref<8x512xf32, #tpu.memory_space<vmem>>, vector<8x512xf32>,
    return
  }
  func.func @transform_0(%arg0: i32) -> (i32, i32) {
    %c0_i32 = arith.constant 0 : i32
    %c0_i32_0 = arith.constant 0 : i32
    return %arg0, %c0_i32 : i32, i32
  }
  func.func @transform_1(%arg0: i32) -> (i32, i32) {
    %c0_i32 = arith.constant 0 : i32
    %c0_i32_0 = arith.constant 0 : i32
    return %arg0, %c0_i32 : i32, i32
  }
  func.func @transform_2(%arg0: i32) -> (i32, i32) {
    %c0_i32 = arith.constant 0 : i32
    %c0_i32_0 = arith.constant 0 : i32
    return %arg0, %c0_i32 : i32, i32
  }
}

</mosaic_0001>

<bundles_post_ra>
// kernel: tpu_custom_call.1
= control target key start
LH: loop header
LB: loop body
LE: loop exit
PB: predicated region body
PF: predicated region fallthrough
CT: control target
= control target key end

     0   :  { %7 = vsyncpa [#allocation3], 0  ;;  %s182_s0 = inlined_call_operand.hbm [shape: f32[8,512], index: 0, kind: input, shape index: {}]   ;;  %s183_s1 = inlined_call_operand.hbm [shape: f32[8,512], index: 1, kind: input, shape index: {}]   ;;  %s184_s2 = inlined_call_operand.hbm [shape: f32[8,512], index: 2, kind: output, shape index: {}]  }
   0x1   :  { %8 = vsyncpa [#allocation6], 0 }
   0x2   :  { %9 = vsyncpa [#allocation4], 0  ;;  %s15_s11 = sshll.u32 %s182_s0, 4  ;;  %s155_s12 = smov [#allocation2]   ;;  %s16_s11 = int_to_ptr.hbm [resolvable:$true] %s15_s11 }
   0x3   :  { %s17_s13 = sshll.u32 %s155_s12, 4  ;;  %s26_s16 = sshll.u32 %s183_s1, 4  ;;  %s18_s13 = int_to_ptr.vmem [resolvable:$true] %s17_s13  ;;  %s27_s16 = int_to_ptr.hbm [resolvable:$true] %s26_s16 }
   0x4   :  { %20 = dma.hbm_to_vmem [thread:$0]  %s16_s11, 512, %s18_s13, [#allocation3]  }
   0x5   :  { %s156_s17 = smov [#allocation5]  }
   0x6   :  { %s28_s18 = sshll.u32 %s156_s17, 4  ;;  %s29_s18 = int_to_ptr.vmem [resolvable:$true] %s28_s18 }
   0x7   :  { %31 = dma.hbm_to_vmem [thread:$0]  %s27_s16, 512, %s29_s18, [#allocation6]  }
   0x8   :  { %149 = dma.done.wait [#allocation3], 512  }
   0x9   :  { %150 = vsyncadd [#allocation3], 4294966784 }
   0xa   :  { %151 = dma.done.wait [#allocation6], 512  }
   0xb   :  { %152 = vsyncadd [#allocation6], 4294966784  ;;  %v40_v0 = vld [vmem:[#allocation2] sm:$0xff]  ;;  %v41_v2 = vld [vmem:[#allocation2 + $0x8] sm:$0xff]  ;;  %s157_s0 = smov [#allocation7]   ;;  %s63_s21 = sshll.u32 %s184_s2, 4  ;;  %s64_s21 = int_to_ptr.hbm [resolvable:$true] %s63_s21 }
   0xc   :  { %v44_v1 = vld [vmem:[#allocation5] sm:$0xff]  ;;  %v45_v4 = vld [vmem:[#allocation5 + $0x8] sm:$0xff]  ;;  %v42_v5 = vld [vmem:[#allocation2 + $0x10] sm:$0xff]  ;;  %s61_s19 = sshll.u32 %s157_s0, 4  ;;  %s62_s19 = int_to_ptr.vmem [resolvable:$true] %s61_s19 }
   0xd   :  { %v48_v3 = vsub.f32 %v40_v0, %v44_v1  ;;  %v46_v6 = vld [vmem:[#allocation5 + $0x10] sm:$0xff]  ;;  %v49_v7 = vsub.f32 %v41_v2, %v45_v4  ;;  %v43_v9 = vld [vmem:[#allocation2 + $0x18] sm:$0xff] }
   0xe   :  { %v50_v8 = vsub.f32 %v42_v5, %v46_v6  ;;  %v47_v10 = vld [vmem:[#allocation5 + $0x18] sm:$0xff] }
   0xf   :  { %52 = vst [vmem:[#allocation7] sm:$0xff] %v48_v3  ;;  %v51_v11 = vsub.f32 %v43_v9, %v47_v10 }
  0x10   :  { %53 = vst [vmem:[#allocation7 + $0x8] sm:$0xff] %v49_v7 }
  0x11   :  { %54 = vst [vmem:[#allocation7 + $0x10] sm:$0xff] %v50_v8 }
  0x12   :  { %55 = vst [vmem:[#allocation7 + $0x18] sm:$0xff] %v51_v11 }
  0x13   :  { %66 = dma.vmem_to_hbm [thread:$0]  %s62_s19, 512, %s64_s21, [#allocation4]  }
  0x14   :  { %153 = dma.done.wait [#allocation4], 512  }
  0x15   :  { %154 = vsyncadd [#allocation4], 4294966784 }
  0x16   :  { %71 = vsyncpa [#allocation3], 1 }
  0x17   :  { %72 = vsyncpa [#allocation6], 1 }
  0x18   :  { %73 = vsyncpa [#allocation4], 1 }

</bundles_post_ra>
